<compile_context>
chip_gen: v7x
topology: tpu7x:2x2x1
jax: 0.10.0
libtpu: 0.0.40
codegen_flags: <defaults>
</compile_context>

<pallas_src>
import functools

import jax
import jax.numpy as jnp
from jax.experimental import pallas as pl
from jax.experimental.pallas import tpu as pltpu

LAMBDA_SPARSE = 0.01
LANE = 128
MAX_BLOCK_ROWS = 8192            # 8192 x 128 x 4B = 4 MiB per f32 input tile
NUM_CORE_SPLITS = 2              # v7x has 2 TCs; harmless (serialized) on v5e/v6e
SMALL_INPUT_THRESHOLD = 1 << 18  # below this, plain XLA reduction is faster
VMEM_LIMIT_BYTES = 40 * 1024 * 1024  # safe on v7x (64 MiB physical), ample headroom


def _to_lane_slab(x):
    """Flatten x into a lane-dense [rows, 128] slab.

    Common case (numel % 128 == 0): pure reshape, no data movement.
    Ragged case: falls back to a zero-pad (full copy).  Zero padding is exact for the
    sum-of-squared-differences as long as both operands are padded identically and the
    mean divisor uses the true element count (it does).
    """
    flat = jnp.reshape(x, (-1,))
    n = flat.shape[0]
    if n % LANE == 0:
        rows = n // LANE
    else:
        rows = n // LANE + 1
        flat = jnp.pad(flat, (0, rows * LANE - n))
    return jnp.reshape(flat, (rows, LANE)), rows


def _sumsq_kernel(recon_ref, wm_ref, out_ref, acc_ref, *,
                  rows, block_rows, bpc, need_mask):
    """Accumulate lane-partial sum of (recon - wm)^2 per core.

    Grid = (num_splits, bpc); axis 0 is "parallel" (core split), axis 1 is the
    "arbitrary" streaming/reduction axis.  acc_ref is a per-core (1,128) VMEM
    accumulator; out_ref is this core's (1,128) row of the partial-sum output.
    """
    i = pl.program_id(1)

    @pl.when(i == 0)
    def _init():
        acc_ref[...] = jnp.zeros_like(acc_ref)

    d = recon_ref[...].astype(jnp.float32) - wm_ref[...].astype(jnp.float32)
    dd = d * d

    if need_mask:
        # Rows beyond the true row count (partial last block / clamped duplicate block)
        # contain unspecified VMEM data; zero their contribution.
        c = pl.program_id(0)
        start_row = (c * bpc + i) * block_rows          # un-clamped global row offset
        valid = rows - start_row                        # may be <= 0 or > block_rows
        row_id = jax.lax.broadcasted_iota(jnp.int32, dd.shape, 0)
        dd = jnp.where(row_id < valid, dd, 0.0)

    # Fold sublanes into a (1,128) lane partial; pure VPU adds + one in-vreg reduce.
    acc_ref[...] += jnp.sum(dd, axis=0, keepdims=True)

    @pl.when(i == bpc - 1)
    def _finalize():
        out_ref[...] = acc_ref[...]


def _recon_sumsq_pallas(reconstruction, weighted_markers):
    """Sum of squared differences over all elements, via the streaming Pallas kernel."""
    recon_slab, rows = _to_lane_slab(reconstruction)
    wm_slab, rows_w = _to_lane_slab(weighted_markers)
    assert rows == rows_w, "reconstruction and weighted_markers must have equal numel"

    block_rows = rows if rows <= MAX_BLOCK_ROWS else MAX_BLOCK_ROWS
    total_blocks = pl.cdiv(rows, block_rows)
    num_splits = NUM_CORE_SPLITS if total_blocks >= NUM_CORE_SPLITS else 1
    bpc = pl.cdiv(total_blocks, num_splits)             # blocks per core
    need_mask = (num_splits * bpc * block_rows != rows)

    def row_block_map(c, i):
        # Clamp so an over-hanging step re-reads the last valid block (masked to 0).
        return (jnp.minimum(c * bpc + i, total_blocks - 1), 0)

    kernel = functools.partial(
        _sumsq_kernel,
        rows=rows, block_rows=block_rows, bpc=bpc, need_mask=need_mask)

    itemsize_r = recon_slab.dtype.itemsize
    itemsize_w = wm_slab.dtype.itemsize
    cost = pl.CostEstimate(
        flops=3 * rows * LANE,
        transcendentals=0,
        bytes_accessed=rows * LANE * (itemsize_r + itemsize_w) + num_splits * LANE * 4)

    partials = pl.pallas_call(
        kernel,
        out_shape=jax.ShapeDtypeStruct((num_splits, LANE), jnp.float32),
        grid=(num_splits, bpc),
        in_specs=[
            pl.BlockSpec((block_rows, LANE), row_block_map),   # reconstruction slab
            pl.BlockSpec((block_rows, LANE), row_block_map),   # weighted_markers slab
        ],
        out_specs=pl.BlockSpec((1, LANE), lambda c, i: (c, 0)),  # lane-dense per-core row
        scratch_shapes=[pltpu.VMEM((1, LANE), jnp.float32)],     # per-core lane partials
        compiler_params=pltpu.CompilerParams(
            dimension_semantics=("parallel", "arbitrary"),
            vmem_limit_bytes=VMEM_LIMIT_BYTES,
        ),
        cost_estimate=cost,
    )(recon_slab, wm_slab)

    return jnp.sum(partials)


def diff_nnls_loss(pred_props, true_props, weighted_markers, reconstruction,
                   weight=None, lambda_sparse=LAMBDA_SPARSE, force_pallas=False):
    """JAX/Pallas equivalent of DiffNNLSLoss.forward.

    Returns (total_loss, {'recon_loss': ..., 'sparsity_loss': ...}) as f32 scalars.
    true_props and weight are accepted for signature parity but unused, matching the
    reference forward (the PyTorch module calls .item(); no host sync is done here).
    """
    del true_props, weight

    n_recon = int(reconstruction.size)

    # Tiny term: L1 sparsity on pred_props (a few hundred bytes) stays in plain jnp.
    sparsity_loss = jnp.float32(lambda_sparse) * jnp.mean(
        jnp.abs(pred_props.astype(jnp.float32)))

    if force_pallas or n_recon >= SMALL_INPUT_THRESHOLD:
        sum_sq = _recon_sumsq_pallas(reconstruction, weighted_markers)
        recon_loss = sum_sq * jnp.float32(1.0 / n_recon)
    else:
        # Small-input fast path: pallas_call dispatch overhead dominates here.
        diff = reconstruction.astype(jnp.float32) - weighted_markers.astype(jnp.float32)
        recon_loss = jnp.mean(diff * diff)

    total_loss = recon_loss + sparsity_loss
    return total_loss, {"recon_loss": recon_loss, "sparsity_loss": sparsity_loss}


def _reference(pred_props, weighted_markers, reconstruction):
    r = jnp.mean((reconstruction.astype(jnp.float32)
                  - weighted_markers.astype(jnp.float32)) ** 2)
    s = LAMBDA_SPARSE * jnp.mean(jnp.abs(pred_props.astype(jnp.float32)))
    return r, s, r + s


if __name__ == "__main__":
    key = jax.random.PRNGKey(0)
    k1, k2, k3, k4 = jax.random.split(key, 4)

    # --- small shapes consistent with the module: batch=2, cell types=4, markers=32 ---
    B, C, M = 2, 4, 32
    pred_props = jax.nn.softmax(jax.random.normal(k1, (B, C), dtype=jnp.float32), axis=-1)
    true_props = jax.nn.softmax(jax.random.normal(k2, (B, C), dtype=jnp.float32), axis=-1)
    weighted_markers = jax.random.normal(k3, (B, M), dtype=jnp.float32)
    reconstruction = weighted_markers + 0.1 * jax.random.normal(k4, (B, M), dtype=jnp.float32)

    total, logs = diff_nnls_loss(pred_props, true_props, weighted_markers,
                                 reconstruction, force_pallas=True)
    total = jax.block_until_ready(total)

    ref_r, ref_s, ref_t = _reference(pred_props, weighted_markers, reconstruction)
    assert jnp.allclose(total, ref_t, rtol=1e-6, atol=1e-6)
    assert jnp.allclose(logs["recon_loss"], ref_r, rtol=1e-6, atol=1e-6)
    assert jnp.allclose(logs["sparsity_loss"], ref_s, rtol=1e-6, atol=1e-6)

    # --- larger shapes: multi-block grid, 2-way core split, partial last block mask ---
    # 94 * 33600 = 3,158,400 elements -> 24675 rows -> 4 blocks of 8192 (last partial).
    k5, k6, k7 = jax.random.split(k4, 3)
    B2, C2, M2 = 94, 16, 33600
    pred2 = jax.nn.softmax(jax.random.normal(k5, (B2, C2), dtype=jnp.float32), axis=-1)
    wm2 = jax.random.normal(k6, (B2, M2), dtype=jnp.float32)
    recon2 = wm2 + 0.1 * jax.random.normal(k7, (B2, M2), dtype=jnp.float32)

    total2, logs2 = diff_nnls_loss(pred2, None, wm2, recon2)
    total2 = jax.block_until_ready(total2)

    ref_r2, ref_s2, ref_t2 = _reference(pred2, wm2, recon2)
    assert jnp.allclose(total2, ref_t2, rtol=2e-5, atol=1e-6)
    assert jnp.allclose(logs2["recon_loss"], ref_r2, rtol=2e-5, atol=1e-6)
    assert jnp.allclose(logs2["sparsity_loss"], ref_s2, rtol=1e-6, atol=1e-7)

    print("KERNEL_OK")
</pallas_src>

<mosaic_0001>
module attributes {stable_mosaic.version = 11 : i64} {
  func.func @_sumsq_kernel(%arg0: i32, %arg1: i32, %arg2: memref<1x128xf32, #tpu.memory_space<vmem>>, %arg3: memref<1x128xf32, #tpu.memory_space<vmem>>, %arg4: memref<1x128xf32, #tpu.memory_space<vmem>>, %arg5: memref<1x128xf32, #tpu.memory_space<vmem>>) attributes {dimension_semantics = [#tpu.dimension_semantics<parallel>, #tpu.dimension_semantics<arbitrary>], iteration_bounds = array<i64: 1, 1>, scalar_prefetch = 0 : i64, scratch_operands = 1 : i64, tpu.core_type = #tpu.core_type<tc>, window_params = [{transform_indices = @transform_0, window_bounds = array<i64: 1, 128>}, {transform_indices = @transform_1, window_bounds = array<i64: 1, 128>}, {transform_indices = @transform_2, window_bounds = array<i64: 1, 128>}]} {
    %c0_i32 = arith.constant 0 : i32
    %0 = arith.cmpi eq, %arg1, %c0_i32 : i32
    %1 = arith.extui %0 : i1 to i32
    %c0_i32_0 = arith.constant 0 : i32
    %2 = arith.cmpi ne, %1, %c0_i32_0 : i32
    scf.if %2 {
      %cst_10 = arith.constant 0.000000e+00 : f32
      %15 = vector.broadcast %cst_10 : f32 to vector<1x128xf32>
      %c0_11 = arith.constant 0 : index
      %c0_12 = arith.constant 0 : index
      %16 = vector.load %arg5[%c0_11, %c0_12] : memref<1x128xf32, #tpu.memory_space<vmem>>, vector<1x128xf32>
      tpu.vector_store %arg5[%c0_11, %c0_12], %15 {strides = array<i32>} : memref<1x128xf32, #tpu.memory_space<vmem>>, vector<1x128xf32>,
    } else {
    }
    %c0 = arith.constant 0 : index
    %c0_1 = arith.constant 0 : index
    %3 = vector.load %arg2[%c0, %c0_1] : memref<1x128xf32, #tpu.memory_space<vmem>>, vector<1x128xf32>
    %c0_2 = arith.constant 0 : index
    %c0_3 = arith.constant 0 : index
    %4 = vector.load %arg3[%c0_2, %c0_3] : memref<1x128xf32, #tpu.memory_space<vmem>>, vector<1x128xf32>
    %5 = arith.subf %3, %4 : vector<1x128xf32>
    %6 = arith.mulf %5, %5 : vector<1x128xf32>
    %c0_4 = arith.constant 0 : index
    %c0_5 = arith.constant 0 : index
    %7 = vector.load %arg5[%c0_4, %c0_5] : memref<1x128xf32, #tpu.memory_space<vmem>>, vector<1x128xf32>
    %cst = arith.constant dense<0.000000e+00> : vector<128xf32>
    %8 = vector.multi_reduction <add>, %6, %cst [0] : vector<1x128xf32> to vector<128xf32>
    %9 = vector.shape_cast %8 : vector<128xf32> to vector<1x128xf32>
    %10 = arith.addf %7, %9 : vector<1x128xf32>
    %c0_6 = arith.constant 0 : index
    %c0_7 = arith.constant 0 : index
    %11 = vector.load %arg5[%c0_6, %c0_7] : memref<1x128xf32, #tpu.memory_space<vmem>>, vector<1x128xf32>
    tpu.vector_store %arg5[%c0_6, %c0_7], %10 {strides = array<i32>} : memref<1x128xf32, #tpu.memory_space<vmem>>, vector<1x128xf32>,
    %c0_i32_8 = arith.constant 0 : i32
    %12 = arith.cmpi eq, %arg1, %c0_i32_8 : i32
    %13 = arith.extui %12 : i1 to i32
    %c0_i32_9 = arith.constant 0 : i32
    %14 = arith.cmpi ne, %13, %c0_i32_9 : i32
    scf.if %14 {
      %c0_10 = arith.constant 0 : index
      %c0_11 = arith.constant 0 : index
      %15 = vector.load %arg5[%c0_10, %c0_11] : memref<1x128xf32, #tpu.memory_space<vmem>>, vector<1x128xf32>
      %c0_12 = arith.constant 0 : index
      %c0_13 = arith.constant 0 : index
      %16 = vector.load %arg4[%c0_12, %c0_13] : memref<1x128xf32, #tpu.memory_space<vmem>>, vector<1x128xf32>
      tpu.vector_store %arg4[%c0_12, %c0_13], %15 {strides = array<i32>} : memref<1x128xf32, #tpu.memory_space<vmem>>, vector<1x128xf32>,
    } else {
    }
    return
  }
  func.func @transform_0(%arg0: i32, %arg1: i32) -> (i32, i32) {
    %c1_i32 = arith.constant 1 : i32
    %0 = arith.muli %arg0, %c1_i32 : i32
    %1 = arith.addi %0, %arg1 : i32
    %c0_i32 = arith.constant 0 : i32
    %2 = arith.minsi %1, %c0_i32 : i32
    %c0_i32_0 = arith.constant 0 : i32
    %c0_i32_1 = arith.constant 0 : i32
    return %2, %c0_i32_0 : i32, i32
  }
  func.func @transform_1(%arg0: i32, %arg1: i32) -> (i32, i32) {
    %c1_i32 = arith.constant 1 : i32
    %0 = arith.muli %arg0, %c1_i32 : i32
    %1 = arith.addi %0, %arg1 : i32
    %c0_i32 = arith.constant 0 : i32
    %2 = arith.minsi %1, %c0_i32 : i32
    %c0_i32_0 = arith.constant 0 : i32
    %c0_i32_1 = arith.constant 0 : i32
    return %2, %c0_i32_0 : i32, i32
  }
  func.func @transform_2(%arg0: i32, %arg1: i32) -> (i32, i32) {
    %c0_i32 = arith.constant 0 : i32
    %c0_i32_0 = arith.constant 0 : i32
    return %arg0, %c0_i32 : i32, i32
  }
}

</mosaic_0001>

<bundles_post_ra>
// kernel: tpu_custom_call.1
= control target key start
LH: loop header
LB: loop body
LE: loop exit
PB: predicated region body
PF: predicated region fallthrough
CT: control target
= control target key end

     0   :  { %7 = vsyncpa [#allocation4], 0  ;;  %s190_s0 = inlined_call_operand.hbm [shape: f32[1,128], index: 0, kind: input, shape index: {}]   ;;  %s191_s1 = inlined_call_operand.vmem [shape: f32[1,128], index: 1, kind: input, shape index: {}]   ;;  %s192_s2 = inlined_call_operand.hbm [shape: f32[1,128], index: 2, kind: output, shape index: {}]  }
   0x1   :  { %8 = vsyncpa [#allocation5], 0  ;;  %s145_s9 = smov [#allocation3]   ;;  %s97_s13 = scalar_lea.hbm %s190_s0, 16 }
   0x2   :  { %s20_s10 = sshll.u32 %s145_s9, 4  ;;  %p98_p0 = scmp.ne.s32.totalorder %s190_s0, %s97_s13  ;;  %s21_s10 = int_to_ptr.vmem [resolvable:$true] %s20_s10 }
   0x3   :  { %p101_p1 = scmp.lt.u32.totalorder %s97_s13, %s190_s0 }
   0x5   :  { %p103_p2 = pnand %p101_p1, %p98_p0 }
   0x7   :  { %106 = shalt.err (!%p103_p2)
}
   0x8   :  { %s107_s18 = scalar_lea.vmem %s21_s10, 16  ;;  %s111_s19 = scalar_lea.vmem %s21_s10, 32 }
   0x9   :  { %p108_p3 = scmp.ne.s32.totalorder %s21_s10, %s107_s18  ;;  %p112_p4 = scmp.lt.s32.totalorder %s21_s10, %s21_s10 }
   0xa   :  { %p113_p5 = scmp.lt.s32.totalorder %s111_s19, %s107_s18 }
   0xc   :  { %p114_p6 = por %p113_p5, %p112_p4 }
   0xe   :  { %p115_p7 = pnand %p114_p6, %p108_p3 }
  0x10   :  { %118 = shalt.err (!%p115_p7)
}
  0x11   :  { %23 = dma.hbm_to_vmem [thread:$0]  %s190_s0, 16, %s21_s10, [#allocation4]  }
  0x12   :  { %141 = dma.done.wait [#allocation4], 16  }
  0x13   :  { %142 = vsyncadd [#allocation4], 4294967280  ;;  %v146_v0 = vmov 0.0   ;;  %v61_v1 = vld [vmem:[#allocation3] sm:$0x1]  ;;  %s147_s24 = smov [#allocation6]  }
  0x14   :  { %60 = vst [vmem:[#allocation2] sm:$0x1] %v146_v0  ;;  %v62_v2 = vld [vmem:[%s191_s1] sm:$0x1]  ;;  %s80_s25 = sshll.u32 %s147_s24, 4  ;;  %s81_s25 = int_to_ptr.vmem [resolvable:$true] %s80_s25 }
  0x15   :  { %v63_v3 = vsub.f32 %v61_v1, %v62_v2  ;;  %s119_s0 = scalar_lea.vmem %s81_s25, 16  ;;  %s123_s26 = scalar_lea.vmem %s81_s25, 32 }
  0x16   :  { %p120_p8 = scmp.ne.s32.totalorder %s81_s25, %s119_s0  ;;  %p124_p9 = scmp.lt.s32.totalorder %s81_s25, %s81_s25 }
  0x17   :  { %v64_v5 = vmul.f32 %v63_v3, %v63_v3  ;;  %p125_p10 = scmp.lt.s32.totalorder %s123_s26, %s119_s0 }
  0x19   :  { %p126_p11 = por %p125_p10, %p124_p9 }
  0x1b   :  { %v65_v4 = vld [vmem:[#allocation2] sm:$0x1]  ;;  %p127_p12 = pnand %p126_p11, %p120_p8 }
  0x1c   :  { %v67_v6 = vadd.f32 %v65_v4, %v64_v5 }
  0x1e   :  { %68 = vst [vmem:[#allocation2] sm:$0x1] %v67_v6 }
  0x25   :  { %v72_v7 = vld [vmem:[#allocation2] sm:$0x1] }
  0x26   :  { %73 = vst [vmem:[#allocation6] sm:$0x1] %v72_v7 }
  0x27   :  { %130 = shalt.err (!%p127_p12)
}
  0x28   :  { %s131_s28 = scalar_lea.hbm %s192_s2, 16 }
  0x29   :  { %p132_p13 = scmp.ne.s32.totalorder %s192_s2, %s131_s28  ;;  %p135_p0 = scmp.lt.u32.totalorder %s131_s28, %s192_s2 }
  0x2b   :  { %p137_p1 = pnand %p135_p0, %p132_p13 }
  0x2d   :  { %140 = shalt.err (!%p137_p1)
}
  0x2e   :  { %83 = dma.vmem_to_hbm [thread:$0]  %s81_s25, 16, %s192_s2, [#allocation5]  }
  0x2f   :  { %143 = dma.done.wait [#allocation5], 16  }
  0x30   :  { %144 = vsyncadd [#allocation5], 4294967280 }
  0x31   :  { %87 = vsyncpa [#allocation4], 1 }
  0x32   :  { %88 = vsyncpa [#allocation5], 1 }

</bundles_post_ra>
